<compile_context>
chip_gen: v5e
topology: v5e:2x2
jax: 0.10.0
libtpu: 0.0.40
codegen_flags: <defaults>
</compile_context>

<pallas_src>
import math
import jax
import jax.numpy as jnp
from jax import lax
from jax.experimental import pallas as pl
from jax.experimental.pallas import tpu as pltpu

_LANES = 128


def _round_up(x, m):
    return ((x + m - 1) // m) * m


def _matmul_bias_kernel(p_ref, w_ref, b_ref, o_ref):
    # p_ref: (TM, Kdim_pad)     bf16 im2col patches (zero-padded contraction dim)
    # w_ref: (Kdim_pad, TN)     bf16 normalized, lane-padded weights
    # b_ref: (1, TN)            f32 bias (lane-padded)
    # o_ref: (TM, TN)           f32 output
    acc = jnp.dot(p_ref[...], w_ref[...], preferred_element_type=jnp.float32)
    o_ref[...] = acc + b_ref[...]


def wn_conv2d_pallas(x_nchw, v, g, b, padding, *, tile_m=128, tile_n=128):
    """Weight-normalized conv2d forward.

    Args:
      x_nchw: (N, Cin, H, W) input (PyTorch NCHW convention).
      v:      (Cout, Cin, K, K) weight direction (PyTorch conv weight layout).
      g:      (Cout,) weight-norm gain.
      b:      (Cout,) bias.
      padding: int, symmetric spatial padding.
    Returns:
      (N, Cout, H_out, W_out) output in NCHW, float32.
    """
    N, Cin, H, W = x_nchw.shape
    Cout, _, K, _ = v.shape

    # ---- parameter glue (plain JAX): weight normalization ------------------
    v32 = v.astype(jnp.float32)
    v_norm = jnp.sqrt(jnp.sum(v32 ** 2, axis=(1, 2, 3), keepdims=True))
    w = g.reshape(Cout, 1, 1, 1).astype(jnp.float32) * v32 / v_norm  # (Cout,Cin,K,K)

    # (Cout, Cin, K, K) -> (K, K, Cin, Cout) -> (K*K*Cin, Cout).
    Kdim = K * K * Cin
    Kdim_pad = _round_up(Kdim, _LANES)           # aligned contraction dim
    cout_pad = _round_up(Cout, tile_n)           # lane-dense output dim
    w_mat = jnp.transpose(w, (2, 3, 1, 0)).reshape(Kdim, Cout)
    w_mat = jnp.pad(w_mat, ((0, Kdim_pad - Kdim),
                            (0, cout_pad - Cout))).astype(jnp.bfloat16)
    bias_pad = jnp.pad(b.astype(jnp.float32),
                       (0, cout_pad - Cout)).reshape(1, cout_pad)

    # ---- layout plumbing: NCHW -> NHWC, pad, im2col (all in bf16) ----------
    x_nhwc = jnp.transpose(x_nchw, (0, 2, 3, 1)).astype(jnp.bfloat16)
    x_pad = jnp.pad(x_nhwc,
                    ((0, 0), (padding, padding), (padding, padding), (0, 0)))
    Hp, Wp = H + 2 * padding, W + 2 * padding
    H_out, W_out = Hp - K + 1, Wp - K + 1

    taps = [x_pad[:, kh:kh + H_out, kw:kw + W_out, :]      # (N, H_out, W_out, Cin)
            for kh in range(K) for kw in range(K)]
    patches = jnp.concatenate(taps, axis=-1)                # (N, H_out, W_out, K*K*Cin)
    M = N * H_out * W_out
    patches = patches.reshape(M, Kdim)

    # Pad rows to a tile multiple and the contraction dim to 128 lanes so every
    # grid step is a full, unmasked MXU tile.
    M_pad = _round_up(M, tile_m)
    patches = jnp.pad(patches, ((0, M_pad - M), (0, Kdim_pad - Kdim)))

    grid = (M_pad // tile_m, cout_pad // tile_n)

    out = pl.pallas_call(
        _matmul_bias_kernel,
        out_shape=jax.ShapeDtypeStruct((M_pad, cout_pad), jnp.float32),
        grid_spec=pltpu.PrefetchScalarGridSpec(
            num_scalar_prefetch=0,
            grid=grid,
            in_specs=[
                pl.BlockSpec((tile_m, Kdim_pad), lambda i, j: (i, 0)),
                pl.BlockSpec((Kdim_pad, tile_n), lambda i, j: (0, j)),
                pl.BlockSpec((1, tile_n), lambda i, j: (0, j)),
            ],
            out_specs=pl.BlockSpec((tile_m, tile_n), lambda i, j: (i, j)),
        ),
        compiler_params=pltpu.CompilerParams(
            dimension_semantics=("parallel", "parallel")),
    )(patches, w_mat, bias_pad)

    out = out[:M, :Cout].reshape(N, H_out, W_out, Cout)
    return jnp.transpose(out, (0, 3, 1, 2))


def _reference(x_nchw, v, g, b, padding):
    """Pure-JAX reference (same bf16 input/weight quantization, f32 accumulate)."""
    Cout = v.shape[0]
    v32 = v.astype(jnp.float32)
    v_norm = jnp.sqrt(jnp.sum(v32 ** 2, axis=(1, 2, 3), keepdims=True))
    w = g.reshape(Cout, 1, 1, 1).astype(jnp.float32) * v32 / v_norm
    x_bf = x_nchw.astype(jnp.bfloat16).astype(jnp.float32)
    w_bf = w.astype(jnp.bfloat16).astype(jnp.float32)
    out = lax.conv_general_dilated(
        x_bf, w_bf,
        window_strides=(1, 1),
        padding=[(padding, padding), (padding, padding)],
        dimension_numbers=("NCHW", "OIHW", "NCHW"),
        preferred_element_type=jnp.float32)
    return out + b.reshape(1, Cout, 1, 1)


if __name__ == "__main__":
    # Small shapes consistent with the module: N=2, Cin=4, H=W=16,
    # Cout=8, kernel_size=3, padding=1, bias=True.
    N, Cin, H, W = 2, 4, 16, 16
    Cout, K, pad = 8, 3, 1

    key = jax.random.PRNGKey(0)
    kx, kv, kg, kb = jax.random.split(key, 4)

    x = jax.random.normal(kx, (N, Cin, H, W), dtype=jnp.float32)

    # Deterministic parameter init (mimicking PyTorch Conv2d kaiming-uniform bounds).
    fan_in = Cin * K * K
    bound_w = math.sqrt(6.0 / fan_in)
    v = jax.random.uniform(kv, (Cout, Cin, K, K), jnp.float32,
                           minval=-bound_w, maxval=bound_w)
    # weight_norm initializes g = ||v|| per output channel
    g = jnp.sqrt(jnp.sum(v ** 2, axis=(1, 2, 3)))
    bound_b = 1.0 / math.sqrt(fan_in)
    b = jax.random.uniform(kb, (Cout,), jnp.float32,
                           minval=-bound_b, maxval=bound_b)

    out = jax.block_until_ready(wn_conv2d_pallas(x, v, g, b, pad))
    ref = jax.block_until_ready(_reference(x, v, g, b, pad))

    assert out.shape == (N, Cout, H, W), out.shape
    assert jnp.allclose(out, ref, atol=1e-2, rtol=1e-2), "mismatch vs reference"

    print("KERNEL_OK")
</pallas_src>

<mosaic_0001>
module attributes {stable_mosaic.version = 11 : i64} {
  func.func @_matmul_bias_kernel(%arg0: i32, %arg1: i32, %arg2: memref<128x128xbf16, #tpu.memory_space<vmem>>, %arg3: memref<128x128xbf16, #tpu.memory_space<vmem>>, %arg4: memref<1x128xf32, #tpu.memory_space<vmem>>, %arg5: memref<128x128xf32, #tpu.memory_space<vmem>>) attributes {dimension_semantics = [#tpu.dimension_semantics<parallel>, #tpu.dimension_semantics<parallel>], iteration_bounds = array<i64: 4, 1>, scalar_prefetch = 0 : i64, scratch_operands = 0 : i64, tpu.core_type = #tpu.core_type<tc>, window_params = [{transform_indices = @transform_0, window_bounds = array<i64: 128, 128>}, {transform_indices = @transform_1, window_bounds = array<i64: 128, 128>}, {transform_indices = @transform_2, window_bounds = array<i64: 1, 128>}, {transform_indices = @transform_3, window_bounds = array<i64: 128, 128>}]} {
    %c0 = arith.constant 0 : index
    %c0_0 = arith.constant 0 : index
    %0 = vector.load %arg2[%c0, %c0_0] : memref<128x128xbf16, #tpu.memory_space<vmem>>, vector<128x128xbf16>
    %c0_1 = arith.constant 0 : index
    %c0_2 = arith.constant 0 : index
    %1 = vector.load %arg3[%c0_1, %c0_2] : memref<128x128xbf16, #tpu.memory_space<vmem>>, vector<128x128xbf16>
    %cst = arith.constant dense<0.000000e+00> : vector<128x128xf32>
    %2 = tpu.matmul %0, %1, %cst {dimension_numbers = #tpu.dot_dimension_numbers<[1], [0], [0], [1], [0, 0, 1, 1], [], []>} : vector<128x128xbf16>, vector<128x128xbf16>, vector<128x128xf32> -> vector<128x128xf32>
    %c0_3 = arith.constant 0 : index
    %c0_4 = arith.constant 0 : index
    %3 = vector.load %arg4[%c0_3, %c0_4] : memref<1x128xf32, #tpu.memory_space<vmem>>, vector<1x128xf32>
    %4 = vector.broadcast %3 : vector<1x128xf32> to vector<128x128xf32>
    %5 = arith.addf %2, %4 : vector<128x128xf32>
    %c0_5 = arith.constant 0 : index
    %c0_6 = arith.constant 0 : index
    %6 = vector.load %arg5[%c0_5, %c0_6] : memref<128x128xf32, #tpu.memory_space<vmem>>, vector<128x128xf32>
    tpu.vector_store %arg5[%c0_5, %c0_6], %5 {strides = array<i32>} : memref<128x128xf32, #tpu.memory_space<vmem>>, vector<128x128xf32>,
    return
  }
  func.func @transform_0(%arg0: i32, %arg1: i32) -> (i32, i32) {
    %c0_i32 = arith.constant 0 : i32
    %c0_i32_0 = arith.constant 0 : i32
    return %arg0, %c0_i32 : i32, i32
  }
  func.func @transform_1(%arg0: i32, %arg1: i32) -> (i32, i32) {
    %c0_i32 = arith.constant 0 : i32
    %c0_i32_0 = arith.constant 0 : i32
    return %c0_i32, %arg1 : i32, i32
  }
  func.func @transform_2(%arg0: i32, %arg1: i32) -> (i32, i32) {
    %c0_i32 = arith.constant 0 : i32
    %c0_i32_0 = arith.constant 0 : i32
    return %c0_i32, %arg1 : i32, i32
  }
  func.func @transform_3(%arg0: i32, %arg1: i32) -> (i32, i32) {
    %c0_i32 = arith.constant 0 : i32
    return %arg0, %arg1 : i32, i32
  }
}

</mosaic_0001>

<bundles_post_ra>
// kernel: tpu_custom_call.1
= control target key start
LH: loop header
LB: loop body
LE: loop exit
PB: predicated region body
PF: predicated region fallthrough
CT: control target
= control target key end

     0   :  { %s1127_s0 = inlined_call_operand.hbm [shape: bf16[512,128], index: 0, kind: input, shape index: {}]   ;;  %s1128_s1 = inlined_call_operand.hbm [shape: bf16[128,128], index: 1, kind: input, shape index: {}]   ;;  %s1129_s2 = inlined_call_operand.vmem [shape: f32[1,128], index: 2, kind: input, shape index: {}]   ;;  %s1130_s3 = inlined_call_operand.hbm [shape: f32[512,128], index: 3, kind: output, shape index: {}]  }
   0x1   :  { %1132 = sst [smem:[#allocation11_spill]] %s1128_s1 }
   0x2   :  { %8 = vsyncpa [#allocation3], 0 }
   0x3   :  { %10 = vsyncpa [#allocation3 + $0x1], 0 }
   0x4   :  { %11 = vsyncpa [#allocation6], 0 }
   0x5   :  { %12 = vsyncpa [#allocation4], 0 }
   0x6   :  { %14 = vsyncpa [#allocation4 + $0x1], 0  ;;  %s941_s12 = smov 0   ;;  %s943_s13 = smov 0  }
   0x7   :  { %s945_s14 = smov 0   ;;  %s947_s15 = smov 0  }
   0x8   :  { %s949_s16 = smov 0   ;;  %s951_s17 = smov 0  }
   0x9 LB: > { %s566_s18 = sadd.s32 4294967295, %s914_s17   ;;  %s567_s19 = sadd.s32 4294967294, %s914_s17   ;;  %s914_s17 = sphi %s951_s17, %s20_s17   ;;  %s910_s16 = sphi %s949_s16, %s1146_s16   ;;  %s906_s15 = sphi %s947_s15, %s1145_s15   ;;  %s902_s14 = sphi %s945_s14, %s1144_s14   ;;  %s898_s13 = sphi %s943_s13, %s1143_s13   ;;  %s894_s12 = sphi %s941_s12, %s1142_s12  }
   0xa   : > { %p52_p0 = scmp.ne.s32.totalorder %s898_s13, %s894_s12  ;;  %p975_p1 = scmp.eq.s32.totalorder %s566_s18, 0 }
   0xb   : > { %p979_p2 = scmp.eq.s32.totalorder %s566_s18, 3  ;;  %p136_p3 = scmp.eq.s32.totalorder %s567_s19, 3 }
   0xc   : > { %p985_p4 = por %p975_p1, %p52_p0  ;;  %p568_p5 = scmp.ge.s32.totalorder %s914_s17, 1 }
   0xd   : > { %p990_p6 = por %p136_p3, %p52_p0  ;;  %p143_p7 = scmp.lt.s32.totalorder %s914_s17, 5 }
   0xe   : > { %s1137_s1 = sld [smem:[#allocation11_spill]]  ;;  %s916_s28 = smov [#allocation5]  }
   0xf   : > { %p998_p8 = pnand %p568_p5, %p143_p7  ;;  %s158_s29 = sshll.u32 %s916_s28, 4  ;;  %s159_s29 = int_to_ptr.vmem [resolvable:$true] %s158_s29 }
  0x10   : > { %s1131_s30 = smov 64   ;;  %s918_s4 = smov 4  }
  0x11   : > { %p698_p9 = pneg %p998_p8  ;;  %s32_s5 = sadd.s32 1, %s910_s16 }
  0x12   : > { %p34_p11 = scmp.ge.s32.totalorder %s32_s5, 4  ;;  %s39_s6 = sadd.s32 1, %s902_s14 }
  0x13   : > { %p699_p10 = pnand %p698_p9, %p975_p1  ;;  %p46_p12 = scmp.ne.s32.totalorder %s902_s14, %s898_s13 }
  0x14   : > { %s156_s26 = sshll.u32 %s1137_s1, 4  ;;  %p47_p13 = scmp.eq.s32.totalorder %s914_s17, 0  ;;  %s157_s26 = int_to_ptr.hbm [resolvable:$true] %s156_s26 }
  0x15   : > { %701 = dma.hbm_to_vmem [thread:$0]  (!%p699_p10), %s157_s26, 1024, %s159_s29, [#allocation6], %s1131_s30, %s1131_s30, %s918_s4  }
  0x16   : > { %s1148_s5 = smov (%p34_p11, %s32_s5), 0  ;;  %p1016_p0 = por %p47_p13, %p46_p12 }
  0x17   : > { %p1022_p3 = por %p979_p2, %p46_p12  ;;  %s36_s9 = ssub.s32 %s910_s16, %s1148_s5 }
  0x18   : > { %p711_p5 = scmp.lt.s32.totalorder %s914_s17, 4  ;;  %p37_p7 = scmp.eq.s32.totalorder %s36_s9, 0 }
  0x19   : > { %s178_s10 = sand.u32 1, %s902_s14   ;;  %s648_s19 = sshll.u32 %s910_s16, 6 }
  0x1a   : > { %s572_s11 = sshll.u32 %s178_s10, 6  ;;  %s187_s26 = scalar_lea.hbm %s1127_s0, %s648_s19 }
  0x1b   : > { %s1031_s18 = scalar_select %p37_p7, %s902_s14, %s39_s6  }
  0x1c   : > { %s182_s28 = scalar_lea.vmem [#allocation2], %s572_s11  ;;  %s188_s21 = sshll.u32 %s187_s26, 4  ;;  %s189_s21 = int_to_ptr.hbm [resolvable:$true] %s188_s21 }
  0x1d   : > { %s190_s29 = sshll.u32 %s182_s28, 4  ;;  %p703_p2 = pnand %p711_p5, %p1016_p0  ;;  %s191_s29 = int_to_ptr.vmem [resolvable:$true] %s190_s29 }
  0x1e   : > { %s179_s30 = scalar_lea.sflag [#allocation3], %s178_s10  ;;  %s1141_s1 = smov 64  }
  0x1f   : > { %705 = dma.hbm_to_vmem [thread:$0]  (!%p703_p2), %s189_s21, 1024, %s191_s29, %s179_s30, %s1141_s1, %s1141_s1, %s918_s4  }
  0x20   : > { %202 = sbr.rel (%p998_p8) target bundleno = 236 (0xec), region = 32  ;;  %s1045_s6 = sand.u32 (!%p998_p8), 1, %s898_s13  }
  0x21   : > { %s576_s9 = sshll.u32 (!%p998_p8), %s1045_s6, 6  ;;  %s205_s11 = scalar_lea.sflag (!%p998_p8), [#allocation3], %s1045_s6 }
  0x22   : > { %s1049_s19 = scalar_lea.vmem (!%p998_p8), [#allocation2], %s576_s9 }
  0x25   : > { %881 = dma.done.wait (%p985_p4), %s205_s11, 1024  }
  0x26   : > { %883 = vsyncadd (%p985_p4), %s205_s11, 4294966272 }
  0x27   : > { %885 = dma.done.wait (%p975_p1), [#allocation6], 1024  }
  0x28   : > { %887 = vsyncadd (%p975_p1), [#allocation6], 4294966272  ;;  %v664_v0 = vld [vmem:[#allocation5 + $0x38] sm:$0xff]  ;;  %v663_v1 = vld [vmem:[#allocation5 + $0x30] sm:$0xff]  ;;  %s578_s1 = sshll.u32 %s1045_s6, 7  ;;  %s665_s30 = sshll.u32 %s906_s15, 7 }
  0x29   : > { %377 = vmatpush.bf16.msra.mxu0 %v664_v0  ;;  %666 = vmatpush.bf16.msra.mxu1 %v664_v0  ;;  %v662_v2 = vld [vmem:[#allocation5 + $0x28] sm:$0xff]  ;;  %v661_v3 = vld [vmem:[#allocation5 + $0x20] sm:$0xff]  ;;  %v660_v4 = vld [vmem:[#allocation5 + $0x18] sm:$0xff]  ;;  %s1071_s27 = scalar_lea.vmem [#allocation7], %s578_s1  ;;  %s455_s10 = scalar_lea.hbm %s1130_s3, %s665_s30 }
  0x2a   : > { %667 = vmatpush.bf16.msra.mxu2 %v664_v0  ;;  %668 = vmatpush.bf16.msra.mxu3 %v664_v0  ;;  %v659_v5 = vld [vmem:[#allocation5 + $0x10] sm:$0xff]  ;;  %v658_v6 = vld [vmem:[#allocation5 + $0x8] sm:$0xff]  ;;  %v657_v7 = vld [vmem:[#allocation5] sm:$0xff]  ;;  %s456_s24 = sshll.u32 %s1071_s27, 4  ;;  %s458_s15 = sshll.u32 %s455_s10, 4  ;;  %s457_s24 = int_to_ptr.vmem [resolvable:$true] %s456_s24  ;;  %s459_s15 = int_to_ptr.hbm [resolvable:$true] %s458_s15 }
  0x2b   : > { %v649_v8 = vld [vmem:[%s1049_s19] sm:$0xff]  ;;  %v651_v9 = vld [vmem:[%s1049_s19 + $0x10] sm:$0xff]  ;;  %v650_v12 = vld [vmem:[%s1049_s19 + $0x8] sm:$0xff]  ;;  %s443_s25 = scalar_lea.sflag [#allocation4], %s1045_s6  ;;  %s842_s26 = sshra.s32 %s459_s15, 4  ;;  %s843_s26 = int_to_ptr.hbm [resolvable:$true] %s842_s26 }
  0x2c   : > { %v653_v10 = vld [vmem:[%s1049_s19 + $0x20] sm:$0xff]  ;;  %v655_v11 = vld [vmem:[%s1049_s19 + $0x30] sm:$0xff]  ;;  %v652_v13 = vld [vmem:[%s1049_s19 + $0x18] sm:$0xff]  ;;  %s844_s28 = scalar_lea.hbm %s843_s26, 128  ;;  %s848_s9 = scalar_lea.hbm %s1130_s3, 512 }
  0x2d   : > { %378 = vmatpush.bf16.msra.mxu0 %v663_v1  ;;  %669 = vmatpush.bf16.msra.mxu1 %v663_v1  ;;  %v654_v14 = vld [vmem:[%s1049_s19 + $0x28] sm:$0xff]  ;;  %v656_v15 = vld [vmem:[%s1049_s19 + $0x38] sm:$0xff]  ;;  %v767_v16 = vld [vmem:[%s1129_s2] ss:$0 sm:$0xff]  ;;  %p845_p1 = scmp.ne.s32.totalorder %s843_s26, %s844_s28  ;;  %p849_p9 = scmp.lt.s32.totalorder %s843_s26, %s1130_s3 }
  0x2e   : > { %670 = vmatpush.bf16.msra.mxu2 %v663_v1  ;;  %671 = vmatpush.bf16.msra.mxu3 %v663_v1  ;;  %p850_p10 = scmp.lt.s32.totalorder %s848_s9, %s844_s28 }
  0x2f   : > { %p846_p4 = pnand %p845_p1, %p1022_p3 }
  0x30   : > { %p851_p11 = por %p850_p10, %p849_p9 }
  0x31   : > { %379 = vmatpush.bf16.msra.mxu0 %v662_v2  ;;  %672 = vmatpush.bf16.msra.mxu1 %v662_v2  ;;  %p847_p8 = pneg %p846_p4 }
  0x32   : > { %673 = vmatpush.bf16.msra.mxu2 %v662_v2  ;;  %674 = vmatpush.bf16.msra.mxu3 %v662_v2 }
  0x33   : > { %p852_p12 = pnand %p851_p11, %p847_p8 }
  0x35   : > { %380 = vmatpush.bf16.msra.mxu0 %v661_v3  ;;  %675 = vmatpush.bf16.msra.mxu1 %v661_v3 }
  0x36   : > { %676 = vmatpush.bf16.msra.mxu2 %v661_v3  ;;  %677 = vmatpush.bf16.msra.mxu3 %v661_v3 }
  0x39   : > { %381 = vmatpush.bf16.msra.mxu0 %v660_v4  ;;  %678 = vmatpush.bf16.msra.mxu1 %v660_v4 }
  0x3a   : > { %679 = vmatpush.bf16.msra.mxu2 %v660_v4  ;;  %680 = vmatpush.bf16.msra.mxu3 %v660_v4 }
  0x3d   : > { %382 = vmatpush.bf16.msra.mxu0 %v659_v5  ;;  %681 = vmatpush.bf16.msra.mxu1 %v659_v5 }
  0x3e   : > { %682 = vmatpush.bf16.msra.mxu2 %v659_v5  ;;  %683 = vmatpush.bf16.msra.mxu3 %v659_v5 }
  0x41   : > { %383 = vmatpush.bf16.msra.mxu0 %v658_v6  ;;  %684 = vmatpush.bf16.msra.mxu1 %v658_v6 }
  0x42   : > { %685 = vmatpush.bf16.msra.mxu2 %v658_v6  ;;  %686 = vmatpush.bf16.msra.mxu3 %v658_v6 }
  0x45   : > { %384 = vmatpush.bf16.msra.mxu0 %v657_v7  ;;  %687 = vmatpush.bf16.msra.mxu1 %v657_v7 }
  0x46   : > { %688 = vmatpush.bf16.msra.mxu2 %v657_v7  ;;  %689 = vmatpush.bf16.msra.mxu3 %v657_v7 }
  0x48   : > { %385 = vmatmul.bf16.vlgmr.msra.gmra.mxu0 %v649_v8  ;;  %395 = vmatmul.bf16.vlgmr.msra.gmra.mxu1 %v651_v9 }
  0x49   : > { %405 = vmatmul.bf16.vlgmr.msra.gmra.mxu2 %v653_v10  ;;  %415 = vmatmul.bf16.vlgmr.msra.gmra.mxu3 %v655_v11 }
  0x58   : > { %390 = vmatmul.bf16.gmra.mxu0 %v650_v12  ;;  %400 = vmatmul.bf16.gmra.mxu1 %v652_v13 }
  0x59   : > { %410 = vmatmul.bf16.gmra.mxu2 %v654_v14  ;;  %420 = vmatmul.bf16.gmra.mxu3 %v656_v15 }
  0xc5   : > { %v386_v17 = vpop.f32.mrf.mxu0  ;;  %v396_v18 = vpop.f32.mrf.mxu1 }
  0xc6   : > { %v387_v19 = vadd.f32 %v767_v16, %v386_v17  ;;  %v397_v20 = vadd.f32 %v767_v16, %v396_v18 }
  0xc8   : > { %426 = vst [vmem:[%s1071_s27] sm:$0xff] %v387_v19 }
  0xc9   : > { %430 = vst [vmem:[%s1071_s27 + $0x20] sm:$0xff] %v397_v20 }
  0xcc   : > { %v406_v21 = vpop.f32.mrf.mxu2  ;;  %v416_v22 = vpop.f32.mrf.mxu3 }
  0xcd   : > { %v407_v23 = vadd.f32 %v767_v16, %v406_v21  ;;  %v417_v24 = vadd.f32 %v767_v16, %v416_v22  ;;  %v388_v25 = vpop.f32.mrf.mxu0  ;;  %v398_v26 = vpop.f32.mrf.mxu1 }
  0xce   : > { %v389_v27 = vadd.f32 %v767_v16, %v388_v25  ;;  %v399_v28 = vadd.f32 %v767_v16, %v398_v26 }
  0xcf   : > { %434 = vst [vmem:[%s1071_s27 + $0x40] sm:$0xff] %v407_v23 }
  0xd0   : > { %438 = vst [vmem:[%s1071_s27 + $0x60] sm:$0xff] %v417_v24 }
  0xd1   : > { %427 = vst [vmem:[%s1071_s27 + $0x8] sm:$0xff] %v389_v27 }
  0xd2   : > { %431 = vst [vmem:[%s1071_s27 + $0x28] sm:$0xff] %v399_v28 }
  0xd4   : > { %v408_v29 = vpop.f32.mrf.mxu2  ;;  %v418_v30 = vpop.f32.mrf.mxu3 }
  0xd5   : > { %v409_v31 = vadd.f32 %v767_v16, %v408_v29  ;;  %v419_v32 = vadd.f32 %v767_v16, %v418_v30  ;;  %v391_v33 = vpop.f32.mrf.mxu0  ;;  %v401_v34 = vpop.f32.mrf.mxu1 }
  0xd6   : > { %v392_v35 = vadd.f32 %v767_v16, %v391_v33  ;;  %v402_v36 = vadd.f32 %v767_v16, %v401_v34 }
  0xd7   : > { %435 = vst [vmem:[%s1071_s27 + $0x48] sm:$0xff] %v409_v31 }
  0xd8   : > { %439 = vst [vmem:[%s1071_s27 + $0x68] sm:$0xff] %v419_v32 }
  0xd9   : > { %428 = vst [vmem:[%s1071_s27 + $0x10] sm:$0xff] %v392_v35 }
  0xda   : > { %432 = vst [vmem:[%s1071_s27 + $0x30] sm:$0xff] %v402_v36 }
  0xdc   : > { %v411_v37 = vpop.f32.mrf.mxu2  ;;  %v421_v38 = vpop.f32.mrf.mxu3 }
  0xdd   : > { %v412_v39 = vadd.f32 %v767_v16, %v411_v37  ;;  %v422_v40 = vadd.f32 %v767_v16, %v421_v38  ;;  %v393_v41 = vpop.f32.mrf.mxu0  ;;  %v403_v42 = vpop.f32.mrf.mxu1 }
  0xde   : > { %v394_v43 = vadd.f32 %v767_v16, %v393_v41  ;;  %v404_v44 = vadd.f32 %v767_v16, %v403_v42 }
  0xdf   : > { %436 = vst [vmem:[%s1071_s27 + $0x50] sm:$0xff] %v412_v39 }
  0xe0   : > { %440 = vst [vmem:[%s1071_s27 + $0x70] sm:$0xff] %v422_v40 }
  0xe1   : > { %429 = vst [vmem:[%s1071_s27 + $0x18] sm:$0xff] %v394_v43 }
  0xe2   : > { %433 = vst [vmem:[%s1071_s27 + $0x38] sm:$0xff] %v404_v44 }
  0xe4   : > { %v413_v45 = vpop.f32.mrf.mxu2  ;;  %v423_v46 = vpop.f32.mrf.mxu3 }
  0xe5   : > { %v414_v47 = vadd.f32 %v767_v16, %v413_v45  ;;  %v424_v48 = vadd.f32 %v767_v16, %v423_v46 }
  0xe7   : > { %437 = vst [vmem:[%s1071_s27 + $0x58] sm:$0xff] %v414_v47 }
  0xe8   : > { %441 = vst [vmem:[%s1071_s27 + $0x78] sm:$0xff] %v424_v48 }
  0xe9   : > { %855 = shalt.err (!%p852_p12)
}
  0xea   : > { %s919_s6 = smov 128   ;;  %s920_s1 = smov 8  }
  0xeb   : > { %696 = dma.vmem_to_hbm [thread:$0]  (%p1022_p3), %s457_s24, 2048, %s459_s15, %s443_s25, %s919_s6, %s919_s6, %s920_s1  }
  0xec PF: > { %p713_p13 = scmp.ge.s32.totalorder %s914_s17, 2  ;;  %s473_s20 = sand.u32 1, %s894_s12  }
  0xed   : > { %s474_s22 = scalar_lea.sflag [#allocation4], %s473_s20 }
  0xee   : > { %p707_p0 = pnand %p713_p13, %p990_p6 }
  0xf0   : > { %p708_p5 = pneg %p707_p0 }
  0xf2   : > { %889 = dma.done.wait (%p708_p5), %s474_s22, 2048  }
  0xf3   : > { %891 = vsyncadd (%p708_p5), %s474_s22, 4294965248  ;;  %s20_s17 = sadd.s32 1, %s914_s17   ;;  %s1142_s12 = smov %s898_s13 }
  0xf4   : > { %p17_p7 = scmp.ge.s32.totalorder %s20_s17, 6   ;;  %s1143_s13 = smov %s902_s14 }
  0xf5   : > { %s1144_s14 = smov %s1031_s18  ;;  %s1145_s15 = smov %s910_s16 }
  0xf6   : > { %s1146_s16 = smov %s1148_s5  ;;  %19 = sbr.rel (!%p17_p7) target bundleno = 9 (0x9), region = 85 }
  0xfb   :  { %480 = vsyncpa [#allocation3], 1 }
  0xfc   :  { %482 = vsyncpa [#allocation3 + $0x1], 1 }
  0xfd   :  { %483 = vsyncpa [#allocation6], 1 }
  0xfe   :  { %484 = vsyncpa [#allocation4], 1 }
  0xff   :  { %486 = vsyncpa [#allocation4 + $0x1], 1 }

</bundles_post_ra>
